<compile_context>
chip_gen: v7x
topology: tpu7x:2x2x1
jax: 0.10.0
libtpu: 0.0.40
codegen_flags: <defaults>
</compile_context>

<pallas_src>
import jax
import jax.numpy as jnp
from jax.experimental import pallas as pl
from jax.experimental.pallas import tpu as pltpu

IN_DIM = 28 * 28 * 1       # 784
HID_DIM = 200
OUT_DIM = 10
HID_PAD = 256              # lane-dense hidden (2 x 128); padded units are exactly 0


def _round_up(n, m):
    return ((n + m - 1) // m) * m


def mlp_kernel(x_ref, w1_ref, b1_ref, w2_ref, b2_ref, o_ref):
    # Cast the loaded f32 tile to bf16 in-kernel (no separate XLA pad/cast op).
    xb = x_ref[...].astype(jnp.bfloat16)
    # fc1: (tm, 784)bf16 @ (784, 256)bf16 -> f32 accumulate on the MXU.
    h = jnp.dot(xb, w1_ref[...], preferred_element_type=jnp.float32)
    # Bias + ReLU in f32 (v5e-friendly: no bf16 VALU needed).
    h = jnp.maximum(h + b1_ref[...], 0.0)
    # fc2: (tm, 256)bf16 @ (256, 10)bf16 -> f32 accumulate.
    y = jnp.dot(h.astype(jnp.bfloat16), w2_ref[...],
                preferred_element_type=jnp.float32)
    # True-width (tm, 10) f32 store; partial-tile rows are masked by Pallas.
    o_ref[...] = (y + b2_ref[...]).astype(o_ref.dtype)


def pack_params(w1, b1, w2, b2):
    """Pad/cast parameters ONCE (call at init time, not per forward).

    Zero padding is exact: padded hidden units are 0 through ReLU and the
    padded rows of W2 are 0, so the (batch, 10) outputs are unchanged.
    """
    w1_p = jnp.zeros((IN_DIM, HID_PAD), jnp.bfloat16).at[:, :HID_DIM].set(
        w1.astype(jnp.bfloat16))
    b1_p = jnp.zeros((1, HID_PAD), jnp.float32).at[:, :HID_DIM].set(b1)
    w2_p = jnp.zeros((HID_PAD, OUT_DIM), jnp.bfloat16).at[:HID_DIM, :].set(
        w2.astype(jnp.bfloat16))
    b2_p = b2.astype(jnp.float32).reshape(1, OUT_DIM)
    return w1_p, b1_p, w2_p, b2_p


def _choose_tm(batch, tm_cap=1024):
    """Batch tile: big (amortize per-step overhead), multiple of 8/16 sublanes,
    and >= 2 grid steps when the batch allows it (v7x megacore)."""
    if batch <= 16:
        return _round_up(batch, 8)
    tm = min(tm_cap, _round_up(pl.cdiv(batch, 2), 16))
    return max(tm, 16)


def net_forward(x, packed_params, *, tm=None):
    """x: (B, 784) f32; packed_params: output of pack_params()."""
    w1_p, b1_p, w2_p, b2_p = packed_params
    batch = x.shape[0]
    if tm is None:
        tm = _choose_tm(batch)
    grid = (pl.cdiv(batch, tm),)

    return pl.pallas_call(
        mlp_kernel,
        out_shape=jax.ShapeDtypeStruct((batch, OUT_DIM), jnp.float32),
        grid=grid,
        in_specs=[
            pl.BlockSpec((tm, IN_DIM), lambda i: (i, 0)),          # x tile (f32)
            pl.BlockSpec((IN_DIM, HID_PAD), lambda i: (0, 0)),     # W1 resident
            pl.BlockSpec((1, HID_PAD), lambda i: (0, 0)),          # b1 resident
            pl.BlockSpec((HID_PAD, OUT_DIM), lambda i: (0, 0)),    # W2 resident
            pl.BlockSpec((1, OUT_DIM), lambda i: (0, 0)),          # b2 resident
        ],
        out_specs=pl.BlockSpec((tm, OUT_DIM), lambda i: (i, 0)),   # true-width out
        compiler_params=pltpu.CompilerParams(
            dimension_semantics=("parallel",)),
    )(x, w1_p, b1_p, w2_p, b2_p)


def init_params(key):
    # Mimics PyTorch's default nn.Linear init: U[-1/sqrt(fan_in), 1/sqrt(fan_in)].
    k1, k2, k3, k4 = jax.random.split(key, 4)
    bound1 = 1.0 / jnp.sqrt(IN_DIM)
    bound2 = 1.0 / jnp.sqrt(HID_DIM)
    w1 = jax.random.uniform(k1, (IN_DIM, HID_DIM), jnp.float32, -bound1, bound1)
    b1 = jax.random.uniform(k2, (1, HID_DIM), jnp.float32, -bound1, bound1)
    w2 = jax.random.uniform(k3, (HID_DIM, OUT_DIM), jnp.float32, -bound2, bound2)
    b2 = jax.random.uniform(k4, (1, OUT_DIM), jnp.float32, -bound2, bound2)
    return w1, b1, w2, b2


if __name__ == "__main__":
    key = jax.random.PRNGKey(0)
    kx, kp = jax.random.split(key)

    batch = 8
    x = jax.random.normal(kx, (batch, IN_DIM), jnp.float32)
    w1, b1, w2, b2 = init_params(kp)

    packed = pack_params(w1, b1, w2, b2)          # one-time packing
    out = net_forward(x, packed)
    jax.block_until_ready(out)
    assert out.shape == (batch, OUT_DIM)

    # Reference with the same bf16 operand rounding / f32 accumulation as the kernel.
    xb = x.astype(jnp.bfloat16).astype(jnp.float32)
    w1b = w1.astype(jnp.bfloat16).astype(jnp.float32)
    w2b = w2.astype(jnp.bfloat16).astype(jnp.float32)
    h_ref = jnp.maximum(xb @ w1b + b1, 0.0)
    ref = h_ref.astype(jnp.bfloat16).astype(jnp.float32) @ w2b + b2
    assert jnp.allclose(out, ref, atol=2e-3, rtol=2e-3)

    # Sanity against the exact f32 math (looser tolerance, bf16 operands).
    ref_f32 = jnp.maximum(x @ w1 + b1, 0.0) @ w2 + b2
    assert jnp.allclose(out, ref_f32, atol=3e-2, rtol=3e-2)

    print("KERNEL_OK")
</pallas_src>

<mosaic_0001>
module attributes {stable_mosaic.version = 11 : i64} {
  func.func @mlp_kernel(%arg0: i32, %arg1: memref<8x784xf32, #tpu.memory_space<vmem>>, %arg2: memref<784x256xbf16, #tpu.memory_space<vmem>>, %arg3: memref<1x256xf32, #tpu.memory_space<vmem>>, %arg4: memref<256x10xbf16, #tpu.memory_space<vmem>>, %arg5: memref<1x10xf32, #tpu.memory_space<vmem>>, %arg6: memref<8x10xf32, #tpu.memory_space<vmem>>) attributes {dimension_semantics = [#tpu.dimension_semantics<parallel>], iteration_bounds = array<i64: 1>, scalar_prefetch = 0 : i64, scratch_operands = 0 : i64, tpu.core_type = #tpu.core_type<tc>, window_params = [{transform_indices = @transform_0, window_bounds = array<i64: 8, 784>}, {pipeline_mode = #tpu.pipeline_mode<synchronous>, transform_indices = @transform_1, window_bounds = array<i64: 784, 256>}, {pipeline_mode = #tpu.pipeline_mode<synchronous>, transform_indices = @transform_2, window_bounds = array<i64: 1, 256>}, {pipeline_mode = #tpu.pipeline_mode<synchronous>, transform_indices = @transform_3, window_bounds = array<i64: 256, 10>}, {pipeline_mode = #tpu.pipeline_mode<synchronous>, transform_indices = @transform_4, window_bounds = array<i64: 1, 10>}, {transform_indices = @transform_5, window_bounds = array<i64: 8, 10>}]} {
    %c0 = arith.constant 0 : index
    %c0_0 = arith.constant 0 : index
    %0 = vector.load %arg1[%c0, %c0_0] : memref<8x784xf32, #tpu.memory_space<vmem>>, vector<8x784xf32>
    %1 = arith.truncf %0 : vector<8x784xf32> to vector<8x784xbf16>
    %c0_1 = arith.constant 0 : index
    %c0_2 = arith.constant 0 : index
    %2 = vector.load %arg2[%c0_1, %c0_2] : memref<784x256xbf16, #tpu.memory_space<vmem>>, vector<784x256xbf16>
    %cst = arith.constant dense<0.000000e+00> : vector<8x256xf32>
    %3 = tpu.matmul %1, %2, %cst {dimension_numbers = #tpu.dot_dimension_numbers<[1], [0], [0], [1], [0, 0, 1, 1], [], []>} : vector<8x784xbf16>, vector<784x256xbf16>, vector<8x256xf32> -> vector<8x256xf32>
    %c0_3 = arith.constant 0 : index
    %c0_4 = arith.constant 0 : index
    %4 = vector.load %arg3[%c0_3, %c0_4] : memref<1x256xf32, #tpu.memory_space<vmem>>, vector<1x256xf32>
    %5 = vector.broadcast %4 : vector<1x256xf32> to vector<8x256xf32>
    %6 = arith.addf %3, %5 : vector<8x256xf32>
    %cst_5 = arith.constant 0.000000e+00 : f32
    %7 = vector.broadcast %cst_5 : f32 to vector<8x256xf32>
    %8 = arith.maximumf %6, %7 : vector<8x256xf32>
    %9 = arith.truncf %8 : vector<8x256xf32> to vector<8x256xbf16>
    %c0_6 = arith.constant 0 : index
    %c0_7 = arith.constant 0 : index
    %10 = vector.load %arg4[%c0_6, %c0_7] : memref<256x10xbf16, #tpu.memory_space<vmem>>, vector<256x10xbf16>
    %cst_8 = arith.constant dense<0.000000e+00> : vector<8x10xf32>
    %11 = tpu.matmul %9, %10, %cst_8 {dimension_numbers = #tpu.dot_dimension_numbers<[1], [0], [0], [1], [0, 0, 1, 1], [], []>} : vector<8x256xbf16>, vector<256x10xbf16>, vector<8x10xf32> -> vector<8x10xf32>
    %c0_9 = arith.constant 0 : index
    %c0_10 = arith.constant 0 : index
    %12 = vector.load %arg5[%c0_9, %c0_10] : memref<1x10xf32, #tpu.memory_space<vmem>>, vector<1x10xf32>
    %13 = vector.broadcast %12 : vector<1x10xf32> to vector<8x10xf32>
    %14 = arith.addf %11, %13 : vector<8x10xf32>
    %c0_11 = arith.constant 0 : index
    %c0_12 = arith.constant 0 : index
    %15 = vector.load %arg6[%c0_11, %c0_12] : memref<8x10xf32, #tpu.memory_space<vmem>>, vector<8x10xf32>
    tpu.vector_store %arg6[%c0_11, %c0_12], %14 {strides = array<i32>} : memref<8x10xf32, #tpu.memory_space<vmem>>, vector<8x10xf32>,
    return
  }
  func.func @transform_0(%arg0: i32) -> (i32, i32) {
    %c0_i32 = arith.constant 0 : i32
    %c0_i32_0 = arith.constant 0 : i32
    return %arg0, %c0_i32 : i32, i32
  }
  func.func @transform_1(%arg0: i32) -> (i32, i32) {
    %c0_i32 = arith.constant 0 : i32
    %c0_i32_0 = arith.constant 0 : i32
    %c0_i32_1 = arith.constant 0 : i32
    return %c0_i32, %c0_i32_0 : i32, i32
  }
  func.func @transform_2(%arg0: i32) -> (i32, i32) {
    %c0_i32 = arith.constant 0 : i32
    %c0_i32_0 = arith.constant 0 : i32
    %c0_i32_1 = arith.constant 0 : i32
    return %c0_i32, %c0_i32_0 : i32, i32
  }
  func.func @transform_3(%arg0: i32) -> (i32, i32) {
    %c0_i32 = arith.constant 0 : i32
    %c0_i32_0 = arith.constant 0 : i32
    %c0_i32_1 = arith.constant 0 : i32
    return %c0_i32, %c0_i32_0 : i32, i32
  }
  func.func @transform_4(%arg0: i32) -> (i32, i32) {
    %c0_i32 = arith.constant 0 : i32
    %c0_i32_0 = arith.constant 0 : i32
    %c0_i32_1 = arith.constant 0 : i32
    return %c0_i32, %c0_i32_0 : i32, i32
  }
  func.func @transform_5(%arg0: i32) -> (i32, i32) {
    %c0_i32 = arith.constant 0 : i32
    %c0_i32_0 = arith.constant 0 : i32
    return %arg0, %c0_i32 : i32, i32
  }
}

</mosaic_0001>

<bundles_post_ra>
// kernel: tpu_custom_call.1
= control target key start
LH: loop header
LB: loop body
LE: loop exit
PB: predicated region body
PF: predicated region fallthrough
CT: control target
= control target key end

     0   :  { %10 = vsyncpa [#allocation3], 0  ;;  %s1512_s0 = inlined_call_operand.vmem [shape: f32[8,784], index: 0, kind: input, shape index: {}]   ;;  %s1513_s1 = inlined_call_operand.hbm [shape: bf16[784,256], index: 1, kind: input, shape index: {}]   ;;  %s1514_s2 = inlined_call_operand.vmem [shape: f32[1,256], index: 2, kind: input, shape index: {}]   ;;  %s1515_s3 = inlined_call_operand.vmem [shape: bf16[256,10], index: 3, kind: input, shape index: {}]   ;;  %s1516_s4 = inlined_call_operand.vmem [shape: f32[1,10], index: 4, kind: input, shape index: {}]   ;;  %s1517_s5 = inlined_call_operand.hbm [shape: f32[8,10], index: 5, kind: output, shape index: {}]  }
   0x1   :  { %11 = vsyncpa [#allocation4], 0  ;;  %s1378_s18 = smov [#allocation2]   ;;  %s1330_s22 = scalar_lea.hbm %s1513_s1, 12544 }
   0x2   :  { %s19_s19 = sshll.u32 %s1378_s18, 4  ;;  %p1331_p0 = scmp.ne.s32.totalorder %s1513_s1, %s1330_s22  ;;  %s20_s19 = int_to_ptr.vmem [resolvable:$true] %s19_s19 }
   0x3   :  { %p1334_p1 = scmp.lt.u32.totalorder %s1330_s22, %s1513_s1 }
   0x5   :  { %p1336_p2 = pnand %p1334_p1, %p1331_p0 }
   0x7   :  { %1339 = shalt.err (!%p1336_p2)
}
   0x8   :  { %s1340_s27 = scalar_lea.vmem %s20_s19, 12544  ;;  %p1345_p4 = scmp.lt.s32.totalorder %s20_s19, %s20_s19 }
   0x9   :  { %p1341_p3 = scmp.ne.s32.totalorder %s20_s19, %s1340_s27  ;;  %p1346_p5 = scmp.lt.s32.totalorder %s1340_s27, %s1340_s27 }
   0xb   :  { %p1347_p6 = por %p1346_p5, %p1345_p4 }
   0xd   :  { %p1348_p7 = pnand %p1347_p6, %p1341_p3 }
   0xf   :  { %1351 = shalt.err (!%p1348_p7)
}
  0x10   :  { %s1379_s28 = smov 128   ;;  %s1380_s29 = smov 8  }
  0x11   :  { %25 = dma.hbm_to_vmem [thread:$0]  %s1513_s1, 12544, %s20_s19, [#allocation3], %s1379_s28, %s1379_s28, %s1380_s29  }
  0x12   :  { %1374 = dma.done.wait [#allocation3], 12544  }
  0x13   :  { %1375 = vsyncadd [#allocation3], 4294954752  ;;  %v1167_v0 = vld [vmem:[#allocation2 + $0x104] ss:$8 sps:$4 sm:$0xff]   ;;  %v1169_v1 = vld [vmem:[#allocation2 + $0x100] ss:$8 sps:$4 sm:$0xff]  }
  0x14   :  { %695 = vmatprep.subr.bf16.mxu0 %v1167_v0  ;;  %v1170_v2 = vld [vmem:[#allocation2 + $0x114] ss:$8 sps:$4 sm:$0xff]   ;;  %v1172_v3 = vld [vmem:[#allocation2 + $0x110] ss:$8 sps:$4 sm:$0xff]   ;;  %v1173_v4 = vld [vmem:[#allocation2 + $0x124] ss:$8 sps:$4 sm:$0xff]  }
  0x15   :  { %696 = vmatpush1.bf16.msra.mxu0 %v1169_v1  ;;  %v1175_v5 = vld [vmem:[#allocation2 + $0x120] ss:$8 sps:$4 sm:$0xff]   ;;  %v1176_v6 = vld [vmem:[#allocation2 + $0x134] ss:$8 sps:$4 sm:$0xff]   ;;  %v1178_v7 = vld [vmem:[#allocation2 + $0x130] ss:$8 sps:$4 sm:$0xff]  }
  0x16   :  { %697 = vmatprep.subr.bf16.mxu0 %v1170_v2  ;;  %v1179_v8 = vld [vmem:[#allocation2 + $0x144] ss:$8 sps:$4 sm:$0xff]   ;;  %v1181_v9 = vld [vmem:[#allocation2 + $0x140] ss:$8 sps:$4 sm:$0xff]   ;;  %v1182_v10 = vld [vmem:[#allocation2 + $0x154] ss:$8 sps:$4 sm:$0xff]  }
  0x17   :  { %v1184_v11 = vld [vmem:[#allocation2 + $0x150] ss:$8 sps:$4 sm:$0xff]   ;;  %v1209_v12 = vld [vmem:[#allocation2 + $0x4] ss:$8 sps:$4 sm:$0xff]   ;;  %v1211_v13 = vld [vmem:[#allocation2] ss:$8 sps:$4 sm:$0xff]  }
  0x18   :  { %v1185_v14 = vld [vmem:[#allocation2 + $0x164] ss:$8 sps:$4 sm:$0xff]   ;;  %654 = vmatprep.subr.bf16.mxu1 %v1209_v12  ;;  %v1215_v15 = vld [vmem:[#allocation2 + $0x14] ss:$8 sps:$4 sm:$0xff]   ;;  %v1217_v16 = vld [vmem:[#allocation2 + $0x10] ss:$8 sps:$4 sm:$0xff]  }
  0x19   :  { %698 = vmatpush1.bf16.msra.mxu0 %v1172_v3  ;;  %655 = vmatpush1.bf16.msra.mxu1 %v1211_v13  ;;  %v1187_v17 = vld [vmem:[#allocation2 + $0x160] ss:$8 sps:$4 sm:$0xff]   ;;  %v1188_v18 = vld [vmem:[#allocation2 + $0x174] ss:$8 sps:$4 sm:$0xff]   ;;  %v1221_v19 = vld [vmem:[#allocation2 + $0x24] ss:$8 sps:$4 sm:$0xff]  }
  0x1a   :  { %699 = vmatprep.subr.bf16.mxu0 %v1173_v4  ;;  %656 = vmatprep.subr.bf16.mxu1 %v1215_v15  ;;  %v39_v20 = vld [vmem:[%s1512_s0 + $0x18] sm:$0xff]  ;;  %v1223_v21 = vld [vmem:[#allocation2 + $0x20] ss:$8 sps:$4 sm:$0xff]   ;;  %v1191_v24 = vld [vmem:[#allocation2 + $0x184] ss:$8 sps:$4 sm:$0xff]   ;;  %vm650_vm0 = vcmask 130048  }
  0x1b   :  { %v46_v22 = vpack.c.bf16 %v39_v20, %v39_v20  ;;  %v1190_v23 = vld [vmem:[#allocation2 + $0x170] ss:$8 sps:$4 sm:$0xff]   ;;  %v1227_v25 = vld [vmem:[#allocation2 + $0x34] ss:$8 sps:$4 sm:$0xff]   ;;  %v1193_v26 = vld [vmem:[#allocation2 + $0x180] ss:$8 sps:$4 sm:$0xff]  }
  0x1c   :  { %v1229_v27 = vld [vmem:[#allocation2 + $0x30] ss:$8 sps:$4 sm:$0xff]   ;;  %v1233_v28 = vld [vmem:[#allocation2 + $0x44] ss:$8 sps:$4 sm:$0xff]   ;;  %v1194_v29 = vld [vmem:[#allocation2 + $0x194] ss:$8 sps:$4 sm:$0xff]  }
  0x1d   :  { %700 = vmatpush1.bf16.msra.mxu0 %v1175_v5  ;;  %657 = vmatpush1.bf16.msra.mxu1 %v1217_v16  ;;  %v1196_v30 = vld [vmem:[#allocation2 + $0x190] ss:$8 sps:$4 sm:$0xff]   ;;  %v1235_v31 = vld [vmem:[#allocation2 + $0x40] ss:$8 sps:$4 sm:$0xff]   ;;  %v1239_v32 = vld [vmem:[#allocation2 + $0x54] ss:$8 sps:$4 sm:$0xff]  }
  0x1e   :  { %701 = vmatprep.subr.bf16.mxu0 %v1176_v6  ;;  %658 = vmatprep.subr.bf16.mxu1 %v1221_v19  ;;  %v1197_v33 = vld [vmem:[#allocation2 + $0x1a4] ss:$8 sps:$4 sm:$0xff]   ;;  %v1199_v34 = vld [vmem:[#allocation2 + $0x1a0] ss:$8 sps:$4 sm:$0xff]   ;;  %v1241_v35 = vld [vmem:[#allocation2 + $0x50] ss:$8 sps:$4 sm:$0xff]  }
  0x1f   :  { %727 = vmatprep.mubr.bf16.mxu0 %v46_v22  ;;  %v1245_v36 = vld [vmem:[#allocation2 + $0x64] ss:$8 sps:$4 sm:$0xff]   ;;  %v1200_v37 = vld [vmem:[#allocation2 + $0x1b4] ss:$8 sps:$4 sm:$0xff]   ;;  %v1202_v38 = vld [vmem:[#allocation2 + $0x1b0] ss:$8 sps:$4 sm:$0xff]  }
  0x20   :  { %v1247_v39 = vld [vmem:[#allocation2 + $0x60] ss:$8 sps:$4 sm:$0xff]   ;;  %v1251_v40 = vld [vmem:[#allocation2 + $0x74] ss:$8 sps:$4 sm:$0xff]   ;;  %v1203_v41 = vld [vmem:[#allocation2 + $0x1c4] ss:$8 sps:$4 sm:$0xff]  }
  0x21   :  { %702 = vmatpush1.bf16.msra.mxu0 %v1178_v7  ;;  %659 = vmatpush1.bf16.msra.mxu1 %v1223_v21  ;;  %v1205_v42 = vld [vmem:[#allocation2 + $0x1c0] ss:$8 sps:$4 sm:$0xff]   ;;  %v1253_v43 = vld [vmem:[#allocation2 + $0x70] ss:$8 sps:$4 sm:$0xff]   ;;  %v1257_v44 = vld [vmem:[#allocation2 + $0x84] ss:$8 sps:$4 sm:$0xff]  }
  0x22   :  { %703 = vmatprep.subr.bf16.mxu0 %v1179_v8  ;;  %660 = vmatprep.subr.bf16.mxu1 %v1227_v25  ;;  %v1206_v45 = vld [vmem:[#allocation2 + $0x1d4] ss:$8 sps:$4 sm:$0xff]   ;;  %v1208_v46 = vld [vmem:[#allocation2 + $0x1d0] ss:$8 sps:$4 sm:$0xff]   ;;  %v1259_v47 = vld [vmem:[#allocation2 + $0x80] ss:$8 sps:$4 sm:$0xff]  }
  0x23   :  { %v1263_v48 = vld [vmem:[#allocation2 + $0x94] ss:$8 sps:$4 sm:$0xff]   ;;  %v1212_v49 = vld [vmem:[#allocation2 + $0x1e4] ss:$8 sps:$4 sm:$0xff]   ;;  %v1214_v50 = vld [vmem:[#allocation2 + $0x1e0] ss:$8 sps:$4 sm:$0xff]  }
  0x24   :  { %v1265_v51 = vld [vmem:[#allocation2 + $0x90] ss:$8 sps:$4 sm:$0xff]   ;;  %v1269_v52 = vld [vmem:[#allocation2 + $0xa4] ss:$8 sps:$4 sm:$0xff]   ;;  %v1218_v53 = vld [vmem:[#allocation2 + $0x1f4] ss:$8 sps:$4 sm:$0xff]  }
  0x25   :  { %704 = vmatpush1.bf16.msra.mxu0 %v1181_v9  ;;  %661 = vmatpush1.bf16.msra.mxu1 %v1229_v27  ;;  %v1220_v54 = vld [vmem:[#allocation2 + $0x1f0] ss:$8 sps:$4 sm:$0xff]   ;;  %v1271_v56 = vld [vmem:[#allocation2 + $0xa0] ss:$8 sps:$4 sm:$0xff]   ;;  %v1275_v57 = vld [vmem:[#allocation2 + $0xb4] ss:$8 sps:$4 sm:$0xff]  }
  0x26   :  { %705 = vmatprep.subr.bf16.mxu0 %v1182_v10  ;;  %662 = vmatprep.subr.bf16.mxu1 %v1233_v28  ;;  %v38_v55 = vld [vmem:[%s1512_s0 + $0x10] sm:$0xff]  ;;  %v1226_v58 = vld [vmem:[#allocation2 + $0x204] ss:$8 sps:$4 sm:$0xff]   ;;  %v1224_v62 = vld [vmem:[#allocation2 + $0x200] ss:$8 sps:$4 sm:$0xff]   ;;  %s1382_s27 = smov [#allocation5]  }
  0x27   :  { %v45_v59 = vpack.c.bf16 %v38_v55, %v38_v55  ;;  %v1277_v60 = vld [vmem:[#allocation2 + $0xb0] ss:$8 sps:$4 sm:$0xff]   ;;  %v37_v61 = vld [vmem:[%s1512_s0 + $0x8] sm:$0xff]  ;;  %v1232_v1 = vld [vmem:[#allocation2 + $0x214] ss:$8 sps:$4 sm:$0xff]   ;;  %s1005_s28 = sshll.u32 %s1382_s27, 4  ;;  %s1006_s28 = int_to_ptr.vmem [resolvable:$true] %s1005_s28 }
  0x28   :  { %v1281_v63 = vld [vmem:[#allocation2 + $0xc4] ss:$8 sps:$4 sm:$0xff]   ;;  %v44_v0 = vpack.c.bf16 %v37_v61, %v37_v61  ;;  %v1283_v2 = vld [vmem:[#allocation2 + $0xc0] ss:$8 sps:$4 sm:$0xff]   ;;  %v1230_v4 = vld [vmem:[#allocation2 + $0x210] ss:$8 sps:$4 sm:$0xff]   ;;  %p1357_p9 = scmp.lt.s32.totalorder %s1006_s28, %s1006_s28 }
  0x29   :  { %706 = vmatpush1.bf16.msra.mxu0 %v1184_v11  ;;  %663 = vmatpush1.bf16.msra.mxu1 %v1235_v31  ;;  %v41_v3 = vld [vmem:[%s1512_s0 + $0x28] sm:$0xff]  ;;  %v1287_v5 = vld [vmem:[#allocation2 + $0xd4] ss:$8 sps:$4 sm:$0xff]   ;;  %v1289_v9 = vld [vmem:[#allocation2 + $0xd0] ss:$8 sps:$4 sm:$0xff]   ;;  %vm997_vm1 = vcmask 80896  }
  0x2a   :  { %707 = vmatprep.subr.bf16.mxu0 %v1185_v14  ;;  %664 = vmatprep.subr.bf16.mxu1 %v1239_v32  ;;  %v48_v6 = vpack.c.bf16 %v41_v3, %v41_v3  ;;  %v1238_v7 = vld [vmem:[#allocation2 + $0x224] ss:$8 sps:$4 sm:$0xff]   ;;  %v1236_v8 = vld [vmem:[#allocation2 + $0x220] ss:$8 sps:$4 sm:$0xff]   ;;  %v1244_v11 = vld [vmem:[#allocation2 + $0x234] ss:$8 sps:$4 sm:$0xff]  }
  0x2b   :  { %686 = vmatprep.mubr.bf16.mxu1 %v44_v0  ;;  %v1293_v10 = vld [vmem:[#allocation2 + $0xe4] ss:$8 sps:$4 sm:$0xff]   ;;  %v1242_v12 = vld [vmem:[#allocation2 + $0x230] ss:$8 sps:$4 sm:$0xff]   ;;  %v1295_v13 = vld [vmem:[#allocation2 + $0xe0] ss:$8 sps:$4 sm:$0xff]  }
  0x2c   :  { %v1299_v14 = vld [vmem:[#allocation2 + $0xf4] ss:$8 sps:$4 sm:$0xff]   ;;  %v1250_v15 = vld [vmem:[#allocation2 + $0x244] ss:$8 sps:$4 sm:$0xff]   ;;  %v1301_v16 = vld [vmem:[#allocation2 + $0xf0] ss:$8 sps:$4 sm:$0xff]  }
  0x2d   :  { %708 = vmatpush1.bf16.msra.mxu0 %v1187_v17  ;;  %665 = vmatpush1.bf16.msra.mxu1 %v1241_v35  ;;  %v36_v17 = vld [vmem:[%s1512_s0] sm:$0xff]  ;;  %v1256_v20 = vld [vmem:[#allocation2 + $0x254] ss:$8 sps:$4 sm:$0xff]   ;;  %v1266_v32 = vld [vmem:[#allocation2 + $0x270] ss:$8 sps:$4 sm:$0xff]   ;;  %s1352_s29 = scalar_lea.vmem %s1006_s28, 128 }
  0x2e   :  { %709 = vmatprep.subr.bf16.mxu0 %v1188_v18  ;;  %666 = vmatprep.subr.bf16.mxu1 %v1245_v36  ;;  %v1248_v18 = vld [vmem:[#allocation2 + $0x240] ss:$8 sps:$4 sm:$0xff]   ;;  %v1310_v19 = vld [vmem:[#allocation2 + $0x304] ss:$8 sps:$4 sm:$0xff]   ;;  %v43_v21 = vpack.c.bf16 %v36_v17, %v36_v17  ;;  %v42_v27 = vld [vmem:[%s1512_s0 + $0x30] sm:$0xff]  ;;  %p1353_p8 = scmp.ne.s32.totalorder %s1006_s28, %s1352_s29  ;;  %p1358_p10 = scmp.lt.s32.totalorder %s1352_s29, %s1352_s29 }
  0x2f   :  { %v1308_v22 = vld [vmem:[#allocation2 + $0x300] ss:$8 sps:$4 sm:$0xff]   ;;  %v1262_v25 = vld [vmem:[#allocation2 + $0x264] ss:$8 sps:$4 sm:$0xff]   ;;  %v1320_v55 = vld [vmem:[%s1515_s3 + $0x58] sm:$0xff]  }
  0x30   :  { %v1260_v28 = vld [vmem:[#allocation2 + $0x260] ss:$8 sps:$4 sm:$0xff]   ;;  %v1326_v61 = vld [vmem:[%s1515_s3 + $0x70] sm:$0xff]   ;;  %v1329_v0 = vld [vmem:[%s1515_s3 + $0x38] sm:$0xff]   ;;  %p1359_p11 = por %p1358_p10, %p1357_p9 }
  0x31   :  { %710 = vmatpush1.bf16.msra.mxu0 %v1190_v23  ;;  %667 = vmatpush1.bf16.msra.mxu1 %v1247_v39  ;;  %v1254_v23 = vld [vmem:[#allocation2 + $0x250] ss:$8 sps:$4 sm:$0xff]   ;;  %v1315_v31 = vld [vmem:[%s1515_s3] sm:$0xff]   ;;  %v1317_v35 = vld [vmem:[%s1515_s3 + $0x8] sm:$0xff]  }
  0x32   :  { %711 = vmatprep.subr.bf16.mxu0 %v1191_v24  ;;  %668 = vmatprep.subr.bf16.mxu1 %v1251_v40  ;;  %v1314_v24 = vld [vmem:[%s1515_s3 + $0x40] sm:$0xff]   ;;  %v1319_v39 = vld [vmem:[%s1515_s3 + $0x10] sm:$0xff]   ;;  %p1360_p12 = pnand %p1359_p11, %p1353_p8 }
  0x33   :  { %v1272_v36 = vld [vmem:[#allocation2 + $0x280] ss:$8 sps:$4 sm:$0xff]   ;;  %v1278_v40 = vld [vmem:[#allocation2 + $0x290] ss:$8 sps:$4 sm:$0xff]  }
  0x35   :  { %712 = vmatpush1.bf16.msra.mxu0 %v1193_v26  ;;  %669 = vmatpush1.bf16.msra.mxu1 %v1253_v43  ;;  %v1381_v26 = vmov 0   ;;  %v1292_v43 = vld [vmem:[#allocation2 + $0x2b4] ss:$8 sps:$4 sm:$0xff]  }
  0x36   :  { %713 = vmatprep.subr.bf16.mxu0 %v1194_v29  ;;  %670 = vmatprep.subr.bf16.mxu1 %v1257_v44  ;;  %v1268_v29 = vld [vmem:[#allocation2 + $0x274] ss:$8 sps:$4 sm:$0xff]   ;;  %v1290_v44 = vld [vmem:[#allocation2 + $0x2b0] ss:$8 sps:$4 sm:$0xff]  }
  0x39   :  { %714 = vmatpush1.bf16.msra.mxu0 %v1196_v30  ;;  %671 = vmatpush1.bf16.msra.mxu1 %v1259_v47  ;;  %v49_v30 = vpack.c.bf16 %v42_v27, %v42_v27  ;;  %v1304_v47 = vld [vmem:[#allocation2 + $0x2d4] ss:$8 sps:$4 sm:$0xff]  }
  0x3a   :  { %715 = vmatprep.subr.bf16.mxu0 %v1197_v33  ;;  %672 = vmatprep.subr.bf16.mxu1 %v1263_v48  ;;  %v1316_v33 = vld [vmem:[%s1515_s3 + $0x48] sm:$0xff]   ;;  %v1302_v48 = vld [vmem:[#allocation2 + $0x2d0] ss:$8 sps:$4 sm:$0xff]  }
  0x3d   :  { %716 = vmatpush1.bf16.msra.mxu0 %v1199_v34  ;;  %673 = vmatpush1.bf16.msra.mxu1 %v1265_v51  ;;  %v1274_v34 = vld [vmem:[#allocation2 + $0x284] ss:$8 sps:$4 sm:$0xff]   ;;  %v1313_v51 = vld [vmem:[#allocation2 + $0x2f4] ss:$8 sps:$4 sm:$0xff]  }
  0x3e   :  { %717 = vmatprep.subr.bf16.mxu0 %v1200_v37  ;;  %674 = vmatprep.subr.bf16.mxu1 %v1269_v52  ;;  %v1318_v37 = vld [vmem:[%s1515_s3 + $0x50] sm:$0xff]  }
  0x3f   :  { %v1311_v52 = vld [vmem:[#allocation2 + $0x2f0] ss:$8 sps:$4 sm:$0xff]  }
  0x41   :  { %718 = vmatpush1.bf16.msra.mxu0 %v1202_v38  ;;  %675 = vmatpush1.bf16.msra.mxu1 %v1271_v56  ;;  %v1280_v38 = vld [vmem:[#allocation2 + $0x294] ss:$8 sps:$4 sm:$0xff]  }
  0x42   :  { %719 = vmatprep.subr.bf16.mxu0 %v1203_v41  ;;  %676 = vmatprep.subr.bf16.mxu1 %v1275_v57  ;;  %v1286_v41 = vld [vmem:[#allocation2 + $0x2a4] ss:$8 sps:$4 sm:$0xff]   ;;  %v1321_v56 = vld [vmem:[%s1515_s3 + $0x18] sm:$0xff]  }
  0x43   :  { %v1322_v57 = vld [vmem:[%s1515_s3 + $0x60] sm:$0xff]  }
  0x45   :  { %720 = vmatpush1.bf16.msra.mxu0 %v1205_v42  ;;  %677 = vmatpush1.bf16.msra.mxu1 %v1277_v60  ;;  %v1284_v42 = vld [vmem:[#allocation2 + $0x2a0] ss:$8 sps:$4 sm:$0xff]  }
  0x46   :  { %721 = vmatprep.subr.bf16.mxu0 %v1206_v45  ;;  %678 = vmatprep.subr.bf16.mxu1 %v1281_v63  ;;  %v1298_v45 = vld [vmem:[#allocation2 + $0x2c4] ss:$8 sps:$4 sm:$0xff]   ;;  %v1328_v63 = vld [vmem:[%s1515_s3 + $0x78] sm:$0xff]  }
  0x47   :  { %v1325_v60 = vld [vmem:[%s1515_s3 + $0x28] sm:$0xff]  }
  0x49   :  { %722 = vmatpush1.bf16.msra.mxu0 %v1208_v46  ;;  %679 = vmatpush1.bf16.msra.mxu1 %v1283_v2  ;;  %v1296_v46 = vld [vmem:[#allocation2 + $0x2c0] ss:$8 sps:$4 sm:$0xff]  }
  0x4a   :  { %723 = vmatprep.subr.bf16.mxu0 %v1212_v49  ;;  %680 = vmatprep.subr.bf16.mxu1 %v1287_v5  ;;  %v1307_v49 = vld [vmem:[#allocation2 + $0x2e4] ss:$8 sps:$4 sm:$0xff]  }
  0x4d   :  { %724 = vmatpush1.bf16.msra.mxu0 %v1214_v50  ;;  %681 = vmatpush1.bf16.msra.mxu1 %v1289_v9  ;;  %v1305_v50 = vld [vmem:[#allocation2 + $0x2e0] ss:$8 sps:$4 sm:$0xff]   ;;  %v150_v9 = vlaneseq }
  0x4e   :  { %725 = vmatprep.subr.bf16.mxu0 %v1218_v53  ;;  %682 = vmatprep.subr.bf16.mxu1 %v1293_v10  ;;  %v40_v53 = vld [vmem:[%s1512_s0 + $0x20] sm:$0xff] }
  0x4f   :  { %v151_v10 = vshrl.u32 %v150_v9, 7 }
  0x51   :  { %726 = vmatpush1.bf16.msra.mxu0 %v1220_v54  ;;  %683 = vmatpush1.bf16.msra.mxu1 %v1295_v13  ;;  %v47_v54 = vpack.c.bf16 %v40_v53, %v40_v53  ;;  %v156_v13 = vsub.s32 1, %v151_v10 }
  0x52   :  { %736 = vmatprep.subr.bf16.mxu0 %v1226_v58  ;;  %684 = vmatprep.subr.bf16.mxu1 %v1299_v14  ;;  %v1323_v58 = vld [vmem:[%s1515_s3 + $0x20] sm:$0xff]  }
  0x54   :  { %728 = vmatmul.mubr.bf16.vlgmr.msra.gmra.mrb[0].mxu0 %v45_v59  ;;  %v1324_v59 = vld [vmem:[%s1515_s3 + $0x68] sm:$0xff]  }
  0x55   :  { %737 = vmatpush1.bf16.msra.mxu0 %v1224_v62  ;;  %768 = vmatprep.mubr.bf16.mxu0 %v48_v6  ;;  %v1327_v62 = vld [vmem:[%s1515_s3 + $0x30] sm:$0xff]  }
  0x56   :  { %738 = vmatprep.subr.bf16.mxu0 %v1232_v1  ;;  %685 = vmatpush1.bf16.msra.mxu1 %v1301_v16 }
  0x57   :  { %777 = vmatprep.subr.bf16.mxu1 %v1310_v19 }
  0x59   :  { %739 = vmatpush1.bf16.msra.mxu0 %v1230_v4  ;;  %687 = vmatmul.mubr.bf16.vlgmr.msra.gmra.mrb[0].mxu1 %v43_v21 }
  0x5a   :  { %740 = vmatprep.subr.bf16.mxu0 %v1238_v7  ;;  %778 = vmatpush1.bf16.msra.mxu1 %v1308_v22 }
  0x5b   :  { %809 = vmatprep.mubr.bf16.mxu1 %v1381_v26  ;;  %1130 = vmatprep.subr.bf16.mxu1 %v1314_v24 }
  0x5d   :  { %741 = vmatpush1.bf16.msra.mxu0 %v1236_v8 }
  0x5e   :  { %742 = vmatprep.subr.bf16.mxu0 %v1244_v11  ;;  %v152_v11 = vsub.s32 0, %v151_v10 }
  0x61   :  { %743 = vmatpush1.bf16.msra.mxu0 %v1242_v12  ;;  %1112 = vmatmul.mubr.msk.bf16.vlgmr.msra.gmra.mrb[4].mxu1 %vm650_vm0, %v49_v30  ;;  %v148_v12 = vld [vmem:[%s1514_s2] sm:$0x3] }
  0x62   :  { %744 = vmatprep.subr.bf16.mxu0 %v1250_v15  ;;  %1131 = vmatpush3.bf16.msra.mxu1 %v1315_v31  ;;  %v153_v14 = vrot.slane %v148_v12, %v152_v11  ;;  %v157_v15 = vrot.slane %v148_v12, %v156_v13  ;;  %v1113_v31 = vld [vmem:[%s1516_s4] ss:$0 sm:$0xff] }
  0x63   :  { %1132 = vmatprep.subr.bf16.mxu1 %v1316_v33 }
  0x65   :  { %745 = vmatpush1.bf16.msra.mxu0 %v1248_v18 }
  0x66   :  { %746 = vmatprep.subr.bf16.mxu0 %v1256_v20  ;;  %1133 = vmatpush3.bf16.msra.mxu1 %v1317_v35 }
  0x67   :  { %1134 = vmatprep.subr.bf16.mxu1 %v1318_v37 }
  0x69   :  { %747 = vmatpush1.bf16.msra.mxu0 %v1254_v23 }
  0x6a   :  { %748 = vmatprep.subr.bf16.mxu0 %v1262_v25  ;;  %1135 = vmatpush3.bf16.msra.mxu1 %v1319_v39 }
  0x6b   :  { %1136 = vmatprep.subr.bf16.mxu1 %v1320_v55 }
  0x6d   :  { %749 = vmatpush1.bf16.msra.mxu0 %v1260_v28 }
  0x6e   :  { %750 = vmatprep.subr.bf16.mxu0 %v1268_v29  ;;  %1137 = vmatpush3.bf16.msra.mxu1 %v1321_v56 }
  0x6f   :  { %1138 = vmatprep.subr.bf16.mxu1 %v1322_v57 }
  0x71   :  { %751 = vmatpush1.bf16.msra.mxu0 %v1266_v32 }
  0x72   :  { %752 = vmatprep.subr.bf16.mxu0 %v1274_v34  ;;  %1139 = vmatpush3.bf16.msra.mxu1 %v1323_v58 }
  0x73   :  { %1140 = vmatprep.subr.bf16.mxu1 %v1324_v59 }
  0x75   :  { %753 = vmatpush1.bf16.msra.mxu0 %v1272_v36 }
  0x76   :  { %754 = vmatprep.subr.bf16.mxu0 %v1280_v38  ;;  %1141 = vmatpush3.bf16.msra.mxu1 %v1325_v60 }
  0x77   :  { %1142 = vmatprep.subr.bf16.mxu1 %v1326_v61 }
  0x79   :  { %755 = vmatpush1.bf16.msra.mxu0 %v1278_v40 }
  0x7a   :  { %756 = vmatprep.subr.bf16.mxu0 %v1286_v41  ;;  %1143 = vmatpush3.bf16.msra.mxu1 %v1327_v62 }
  0x7b   :  { %1144 = vmatprep.subr.bf16.mxu1 %v1328_v63 }
  0x7d   :  { %757 = vmatpush1.bf16.msra.mxu0 %v1284_v42 }
  0x7e   :  { %758 = vmatprep.subr.bf16.mxu0 %v1292_v43  ;;  %1145 = vmatpush3.bf16.msra.mxu1 %v1329_v0 }
  0x81   :  { %759 = vmatpush1.bf16.msra.mxu0 %v1290_v44 }
  0x82   :  { %760 = vmatprep.subr.bf16.mxu0 %v1298_v45 }
  0x85   :  { %761 = vmatpush1.bf16.msra.mxu0 %v1296_v46 }
  0x86   :  { %762 = vmatprep.subr.bf16.mxu0 %v1304_v47 }
  0x89   :  { %763 = vmatpush1.bf16.msra.mxu0 %v1302_v48 }
  0x8a   :  { %764 = vmatprep.subr.bf16.mxu0 %v1307_v49 }
  0x8d   :  { %765 = vmatpush1.bf16.msra.mxu0 %v1305_v50 }
  0x8e   :  { %766 = vmatprep.subr.bf16.mxu0 %v1313_v51 }
  0x91   :  { %767 = vmatpush1.bf16.msra.mxu0 %v1311_v52 }
  0x94   :  { %769 = vmatmul.mubr.bf16.vlgmr.msra.gmra.mrb[0].mxu0 %v47_v54 }
 0x12c   :  { %v688_v1 = vpop.f32.mrb[0].mxu1 }
 0x12d   :  { %v690_v2 = vpop.f32.mrb[1].mxu1  ;;  %v689_v16 = vadd.f32 %v688_v1, %v153_v14 }
 0x12e   :  { %v692_v3 = vpop.f32.mrb[2].mxu1  ;;  %v691_v17 = vadd.f32 %v690_v2, %v157_v15 }
 0x12f   :  { %v693_v4 = vpop.f32.mrb[3].mxu1 }
 0x134   :  { %v811_v5 = vpop.f32.mrb[4].mxu1 }
 0x135   :  { %v813_v6 = vpop.f32.mrb[5].mxu1 }
 0x136   :  { %v815_v7 = vpop.f32.mrb[6].mxu1 }
 0x137   :  { %v816_v8 = vpop.f32.mrb[7].mxu1 }
 0x167   :  { %v770_v18 = vpop.f32.mrb[0].mxu0 }
 0x168   :  { %v1153_v19 = vadd.f32 %v770_v18, %v689_v16  ;;  %v772_v20 = vpop.f32.mrb[1].mxu0 }
 0x169   :  { %v1156_v21 = vadd.f32 %v772_v20, %v691_v17  ;;  %v774_v22 = vpop.f32.mrb[2].mxu0 }
 0x16a   :  { %v1154_v23 = vadd.f32 %v1153_v19, %v811_v5  ;;  %v775_v24 = vpop.f32.mrb[3].mxu0 }
 0x16b   :  { %v1157_v25 = vadd.f32 %v1156_v21, %v813_v6 }
 0x16c   :  { %v818_v26 = vmax.f32 %v1154_v23, 0.0 }
 0x16d   :  { %v819_v27 = vmax.f32 %v1157_v25, 0.0 }
 0x16e   :  { %v820_v29 = vpack.c.bf16 %v818_v26, %v818_v26 }
 0x16f   :  { %v821_v28 = vpack.c.bf16 %v819_v27, %v819_v27 }
 0x171   :  { %989 = vmatprep.mubr.bf16.mxu1 %v821_v28 }
 0x172   :  { %990 = vmatmul.mubr.bf16.vlgmr.msra.gmra.mrb[8].mxu1 %v820_v29 }
 0x245   :  { %v1146_v30 = vpop.f32.mrb[8].mxu1 }
 0x246   :  { %v1147_v32 = vpop.f32.mrb[9].mxu1 }
 0x247   :  { %v1148_v33 = vadd.f32 %v1147_v32, %v1146_v30  ;;  %v1149_v34 = vpop.f32.mrb[10].mxu1 }
 0x248   :  { %v1150_v35 = vpop.f32.mrb[11].mxu1 }
 0x249   :  { %v992_v36 = vadd.f32 %v1148_v33, %v1113_v31 }
 0x24b   :  { %998 = vst.msk [vmem:[#allocation5] sm:$0xff] %vm997_vm1, %v992_v36 }
 0x24c   :  { %1363 = shalt.err (!%p1360_p12)
}
 0x24d   :  { %s1364_s4 = scalar_lea.hbm %s1517_s5, 128 }
 0x24e   :  { %p1365_p13 = scmp.ne.s32.totalorder %s1517_s5, %s1364_s4  ;;  %p1368_p0 = scmp.lt.u32.totalorder %s1364_s4, %s1517_s5 }
 0x250   :  { %p1370_p1 = pnand %p1368_p0, %p1365_p13 }
 0x252   :  { %1373 = shalt.err (!%p1370_p1)
}
 0x253   :  { %1008 = dma.vmem_to_hbm [thread:$0]  %s1006_s28, 128, %s1517_s5, [#allocation4]  }
 0x254   :  { %1376 = dma.done.wait [#allocation4], 128  }
 0x255   :  { %1377 = vsyncadd [#allocation4], 4294967168 }
 0x256   :  { %1012 = vsyncpa [#allocation3], 1 }
 0x257   :  { %1013 = vsyncpa [#allocation4], 1 }

</bundles_post_ra>
